<compile_context>
chip_gen: v5e
topology: v5e:2x2
jax: 0.10.0
libtpu: 0.0.40
codegen_flags: <defaults>
</compile_context>

<pallas_src>
import jax
import jax.numpy as jnp
from jax.experimental import pallas as pl
from jax.experimental.pallas import tpu as pltpu

THRESH = 0.5
EPS = 1e-5

_LANE = 128


def _round_up(x, m):
    return (x + m - 1) // m * m


def _sublanes(dtype):
    # 32-bit -> 8 sublanes per vreg tile; 16-bit -> 16; 8-bit -> 32 (packed).
    return 8 * max(1, 4 // jnp.dtype(dtype).itemsize)


def _vmem_limit_bytes():
    # Generation-aware VMEM budget (v5e/v6e: 128 MiB, v7x: 64 MiB physical).
    try:
        cap = int(pltpu.get_tpu_info().vmem_capacity_bytes)
    except Exception:
        cap = 64 * 1024 * 1024          # conservative fallback (v7x physical)
    return int(min(cap * 3 // 4, 96 * 1024 * 1024))


def _reference(x, weight, bias, eps=EPS):
    """Pure-JAX training-mode BatchNorm over channel axis 2 of (T,N,C,H,W)."""
    mean = jnp.mean(x, axis=(0, 1, 3, 4), keepdims=True)
    var = jnp.mean((x - mean) ** 2, axis=(0, 1, 3, 4), keepdims=True)
    w = weight.reshape(1, 1, -1, 1, 1)
    b = bias.reshape(1, 1, -1, 1, 1)
    return (x - mean) * jax.lax.rsqrt(var + eps) * w + b


# ----------------------------------------------------------------------------
# Fused path: the whole (B, C, S) tensor is resident in VMEM (small SNN maps).
# ----------------------------------------------------------------------------
def _fused_forward(xr, w31, b31, eps, vmem_limit):
    B, C, S = xr.shape
    inv_m = 1.0 / float(B * S)

    def kernel(x_ref, w_ref, b_ref, o_ref):
        x = x_ref[...].astype(jnp.float32)                               # (B, C, S)
        s = jnp.sum(jnp.sum(x, axis=0, keepdims=True), axis=-1, keepdims=True)      # (1,C,1)
        q = jnp.sum(jnp.sum(x * x, axis=0, keepdims=True), axis=-1, keepdims=True)  # (1,C,1)
        mean = s * inv_m
        # TODO(synk): E[x^2]-mean^2 can cancel for extreme inputs; a Welford
        # combine would be more robust.  Clamp keeps var >= 0.
        var = jnp.maximum(q * inv_m - mean * mean, 0.0)
        scale = w_ref[...] * jax.lax.rsqrt(var + eps)                    # (1, C, 1)
        shift = b_ref[...] - mean * scale
        o_ref[...] = (x * scale + shift).astype(o_ref.dtype)

    isz = jnp.dtype(xr.dtype).itemsize
    return pl.pallas_call(
        kernel,
        out_shape=jax.ShapeDtypeStruct((B, C, S), xr.dtype),
        compiler_params=pltpu.CompilerParams(vmem_limit_bytes=vmem_limit),
        cost_estimate=pl.CostEstimate(flops=5 * B * C * S, transcendentals=C,
                                      bytes_accessed=2 * B * C * S * isz),
    )(xr, w31, b31)


# ----------------------------------------------------------------------------
# Streaming two-pass path.
# ----------------------------------------------------------------------------
def _streaming_forward(x5, weight_f32, bias_f32, eps, vmem_limit, max_block_rows):
    T, N, C, H, W = x5.shape
    B, S, L = T * N, H * W, C * H * W
    dtype = x5.dtype
    isz = jnp.dtype(dtype).itemsize
    sub_in = _sublanes(dtype)

    xr3 = x5.reshape(B, C, S)        # stats view      (free reshape)
    xr2 = x5.reshape(B, L)           # lane-dense view (free reshape)

    # ---- pass 1: per-channel partial sums --------------------------------
    # Block rows sized from PADDED VMEM bytes (sublane/lane tiling), not logical.
    row_in = _round_up(C, sub_in) * _round_up(S, _LANE) * isz
    row_f32 = _round_up(C, 8) * _round_up(S, _LANE) * 4
    stats_budget = min(vmem_limit, 48 * 1024 * 1024) // 3
    per_row = 2 * row_in + 2 * row_f32            # double-buffered input + f32 temps
    # TODO(synk): sub-tile S if a single (C, S) row ever exceeds the VMEM budget.
    tb = max(1, min(B, stats_budget // per_row))
    tb = min(tb, max(1, (B + 3) // 4))            # >= 4 blocks so a 2-TC split has work
    if max_block_rows is not None:
        tb = max(1, min(tb, max_block_rows))
    nb = (B + tb - 1) // tb
    nb_half = (nb + 1) // 2                        # per-"core" block count (grid = (2, nb_half))

    def stats_kernel(x_ref, sum_ref, sumsq_ref):
        j = pl.program_id(1)

        @pl.when(j == 0)
        def _():
            sum_ref[...] = jnp.zeros_like(sum_ref)
            sumsq_ref[...] = jnp.zeros_like(sumsq_ref)

        blk = pl.program_id(0) * nb_half + j
        nvalid = B - blk * tb                      # <= 0 for the duplicated clamp block

        @pl.when(nvalid > 0)
        def _():
            x = x_ref[...].astype(jnp.float32)                 # (tb, C, S)
            xs = jnp.sum(x, axis=-1)                           # (tb, C) lane reduce
            xq = jnp.sum(x * x, axis=-1)                       # (tb, C)
            rows = jax.lax.broadcasted_iota(jnp.int32, (tb, C), 0)
            keep = rows < nvalid                               # only the ragged block masks
            xs = jnp.where(keep, xs, 0.0)                      # select: NaN-safe vs stale pad
            xq = jnp.where(keep, xq, 0.0)
            sum_ref[...] += jnp.sum(xs, axis=0)[None, None, :]
            sumsq_ref[...] += jnp.sum(xq, axis=0)[None, None, :]

    def x_stats_map(p, j):
        # Clamp so the duplicated / past-the-end block never DMAs out of range;
        # its contribution is skipped in-kernel (nvalid <= 0).
        return (jnp.minimum(p * nb_half + j, nb - 1), 0, 0)

    s_part, q_part = pl.pallas_call(
        stats_kernel,
        out_shape=(jax.ShapeDtypeStruct((2, 1, C), jnp.float32),
                   jax.ShapeDtypeStruct((2, 1, C), jnp.float32)),
        grid_spec=pltpu.PrefetchScalarGridSpec(
            num_scalar_prefetch=0,
            grid=(2, nb_half),
            in_specs=[pl.BlockSpec((tb, C, S), x_stats_map)],
            out_specs=[pl.BlockSpec((1, 1, C), lambda p, j: (p, 0, 0)),
                       pl.BlockSpec((1, 1, C), lambda p, j: (p, 0, 0))],
        ),
        compiler_params=pltpu.CompilerParams(
            # TODO(synk): pltpu.CORE_PARALLEL on the leading axis would force a
            # real 2-TensorCore split on v7x; kept "parallel" for portability.
            dimension_semantics=("parallel", "arbitrary"),
            vmem_limit_bytes=vmem_limit,
        ),
        cost_estimate=pl.CostEstimate(flops=3 * B * C * S, transcendentals=0,
                                      bytes_accessed=B * C * S * isz),
    )(xr3)

    # ---- tiny per-channel glue (C elements) -------------------------------
    m_total = float(B * S)
    sum_c = jnp.sum(s_part[:, 0, :], axis=0)
    sumsq_c = jnp.sum(q_part[:, 0, :], axis=0)
    mean = sum_c / m_total
    # TODO(synk): E[x^2]-mean^2 in f32 can cancel for huge B*S; a Welford
    # combine would be more robust.  Clamp keeps var >= 0.
    var = jnp.maximum(sumsq_c / m_total - mean * mean, 0.0)
    inv_std = jax.lax.rsqrt(var + eps)
    scale_c = weight_f32 * inv_std
    shift_c = bias_f32 - mean * scale_c
    # Per-element scale/shift so pass 2 runs on the lane-dense (B, L) view.
    ss = jnp.stack([jnp.repeat(scale_c, S), jnp.repeat(shift_c, S)], axis=0)   # (2, L) f32

    # ---- pass 2: lane-dense normalize + affine -----------------------------
    Lp = _round_up(L, _LANE)
    fixed = 2 * 8 * Lp * 4                       # resident (2, L) f32 ss block (2 buffers)
    apply_budget = max(min(vmem_limit, 48 * 1024 * 1024) - fixed, 4 * 1024 * 1024)
    per_row2 = Lp * (2 * isz + 2 * isz + 4)      # in + out (double-buffered) + f32 temp
    tb2 = max(1, min(B, apply_budget // per_row2))
    tb2 = min(tb2, max(1, (B + 3) // 4))
    if max_block_rows is not None:
        tb2 = max(1, min(tb2, max_block_rows))
    if tb2 >= sub_in:
        tb2 = (tb2 // sub_in) * sub_in           # sublane-aligned row blocks when possible
    nb2 = (B + tb2 - 1) // tb2

    def apply_kernel(x_ref, ss_ref, o_ref):
        x = x_ref[...].astype(jnp.float32)                     # (tb2, L)
        o_ref[...] = (x * ss_ref[0:1, :] + ss_ref[1:2, :]).astype(o_ref.dtype)

    yr = pl.pallas_call(
        apply_kernel,
        out_shape=jax.ShapeDtypeStruct((B, L), dtype),
        grid_spec=pltpu.PrefetchScalarGridSpec(
            num_scalar_prefetch=0,
            grid=(nb2,),
            in_specs=[pl.BlockSpec((tb2, L), lambda i: (i, 0)),
                      pl.BlockSpec((2, L), lambda i: (0, 0))],
            out_specs=pl.BlockSpec((tb2, L), lambda i: (i, 0)),
        ),
        compiler_params=pltpu.CompilerParams(
            dimension_semantics=("parallel",),
            vmem_limit_bytes=vmem_limit,
        ),
        cost_estimate=pl.CostEstimate(flops=2 * B * L, transcendentals=0,
                                      bytes_accessed=2 * B * L * isz + 2 * L * 4),
    )(xr2, ss)

    return yr.reshape(T, N, C, H, W)


# ----------------------------------------------------------------------------
# Dispatcher.
# ----------------------------------------------------------------------------
def batch_norm_2d_forward(x, weight, bias, eps=EPS, *, force_streaming=False,
                          max_block_rows=None):
    """x: (T, N, C, H, W). Returns same shape/dtype (training-mode BatchNorm)."""
    T, N, C, H, W = x.shape
    B, S = T * N, H * W
    vmem_limit = _vmem_limit_bytes()
    isz = jnp.dtype(x.dtype).itemsize
    sub_in = _sublanes(x.dtype)

    weight_f32 = weight.astype(jnp.float32)
    bias_f32 = bias.astype(jnp.float32)

    # Fused path: whole tensor (PADDED bytes) + f32 temps resident in VMEM.
    slab_in = B * _round_up(C, sub_in) * _round_up(S, _LANE) * isz
    slab_f32 = B * _round_up(C, 8) * _round_up(S, _LANE) * 4
    fused_working = 2 * slab_in + 2 * slab_f32
    if not force_streaming and fused_working <= vmem_limit // 2:
        y = _fused_forward(x.reshape(B, C, S),
                           weight_f32.reshape(1, C, 1),
                           bias_f32.reshape(1, C, 1),
                           eps, vmem_limit)
        return y.reshape(T, N, C, H, W)

    return _streaming_forward(x, weight_f32, bias_f32, eps, vmem_limit, max_block_rows)


if __name__ == "__main__":
    # Small SNN-like shapes: (T, N, C, H, W)
    T, N, C, H, W = 4, 2, 4, 8, 8
    key = jax.random.PRNGKey(0)
    key_a, key_b = jax.random.split(key)
    x = jax.random.normal(key_a, (T, N, C, H, W), dtype=jnp.float32)

    # Deterministic parameter init per BatchNorm3d1.reset_parameters()
    weight = jnp.full((C,), THRESH, dtype=jnp.float32)   # = thresh
    bias = jnp.zeros((C,), dtype=jnp.float32)

    # Fused (fits-in-VMEM) path.
    y = jax.block_until_ready(batch_norm_2d_forward(x, weight, bias))
    assert y.shape == x.shape and y.dtype == x.dtype
    assert jnp.max(jnp.abs(y - _reference(x, weight, bias))) < 1e-4

    # Streaming two-pass path (forced), with ragged row blocks and a duplicated
    # clamp block: B = 13 rows, tb = 3 -> 5 real blocks, grid (2, 3) covers 6.
    T2, N2 = 13, 1
    x2 = jax.random.normal(key_b, (T2, N2, C, H, W), dtype=jnp.float32)
    y2 = jax.block_until_ready(
        batch_norm_2d_forward(x2, weight, bias, force_streaming=True, max_block_rows=3))
    assert y2.shape == x2.shape and y2.dtype == x2.dtype
    assert jnp.max(jnp.abs(y2 - _reference(x2, weight, bias))) < 1e-4

    print("KERNEL_OK")
</pallas_src>

<mosaic_0001>
module attributes {stable_mosaic.version = 11 : i64} {
  func.func @kernel(%arg0: memref<8x4x64xf32, #tpu.memory_space<vmem>>, %arg1: memref<1x4x1xf32, #tpu.memory_space<vmem>>, %arg2: memref<1x4x1xf32, #tpu.memory_space<vmem>>, %arg3: memref<8x4x64xf32, #tpu.memory_space<vmem>>) attributes {dimension_semantics = [], scalar_prefetch = 0 : i64, scratch_operands = 0 : i64, tpu.core_type = #tpu.core_type<tc>} {
    %c0 = arith.constant 0 : index
    %c0_0 = arith.constant 0 : index
    %c0_1 = arith.constant 0 : index
    %0 = vector.load %arg0[%c0, %c0_0, %c0_1] : memref<8x4x64xf32, #tpu.memory_space<vmem>>, vector<8x4x64xf32>
    %cst = arith.constant dense<0.000000e+00> : vector<4x64xf32>
    %1 = vector.multi_reduction <add>, %0, %cst [0] : vector<8x4x64xf32> to vector<4x64xf32>
    %2 = vector.shape_cast %1 : vector<4x64xf32> to vector<1x4x64xf32>
    %cst_2 = arith.constant dense<0.000000e+00> : vector<1x4xf32>
    %3 = vector.multi_reduction <add>, %2, %cst_2 [2] : vector<1x4x64xf32> to vector<1x4xf32>
    %4 = vector.shape_cast %3 : vector<1x4xf32> to vector<1x4x1xf32>
    %5 = arith.mulf %0, %0 : vector<8x4x64xf32>
    %cst_3 = arith.constant dense<0.000000e+00> : vector<4x64xf32>
    %6 = vector.multi_reduction <add>, %5, %cst_3 [0] : vector<8x4x64xf32> to vector<4x64xf32>
    %7 = vector.shape_cast %6 : vector<4x64xf32> to vector<1x4x64xf32>
    %cst_4 = arith.constant dense<0.000000e+00> : vector<1x4xf32>
    %8 = vector.multi_reduction <add>, %7, %cst_4 [2] : vector<1x4x64xf32> to vector<1x4xf32>
    %9 = vector.shape_cast %8 : vector<1x4xf32> to vector<1x4x1xf32>
    %cst_5 = arith.constant 0.001953125 : f32
    %10 = vector.broadcast %cst_5 : f32 to vector<1x4x1xf32>
    %11 = arith.mulf %4, %10 : vector<1x4x1xf32>
    %cst_6 = arith.constant 0.001953125 : f32
    %12 = vector.broadcast %cst_6 : f32 to vector<1x4x1xf32>
    %13 = arith.mulf %9, %12 : vector<1x4x1xf32>
    %14 = arith.mulf %11, %11 : vector<1x4x1xf32>
    %15 = arith.subf %13, %14 : vector<1x4x1xf32>
    %cst_7 = arith.constant 0.000000e+00 : f32
    %16 = vector.broadcast %cst_7 : f32 to vector<1x4x1xf32>
    %17 = arith.maximumf %15, %16 : vector<1x4x1xf32>
    %c0_8 = arith.constant 0 : index
    %c0_9 = arith.constant 0 : index
    %c0_10 = arith.constant 0 : index
    %18 = vector.load %arg1[%c0_8, %c0_9, %c0_10] : memref<1x4x1xf32, #tpu.memory_space<vmem>>, vector<1x4x1xf32>
    %cst_11 = arith.constant 9.99999974E-6 : f32
    %19 = vector.broadcast %cst_11 : f32 to vector<1x4x1xf32>
    %20 = arith.addf %17, %19 : vector<1x4x1xf32>
    %21 = math.rsqrt %20 : vector<1x4x1xf32>
    %22 = arith.mulf %18, %21 : vector<1x4x1xf32>
    %c0_12 = arith.constant 0 : index
    %c0_13 = arith.constant 0 : index
    %c0_14 = arith.constant 0 : index
    %23 = vector.load %arg2[%c0_12, %c0_13, %c0_14] : memref<1x4x1xf32, #tpu.memory_space<vmem>>, vector<1x4x1xf32>
    %24 = arith.mulf %11, %22 : vector<1x4x1xf32>
    %25 = arith.subf %23, %24 : vector<1x4x1xf32>
    %26 = vector.broadcast %22 : vector<1x4x1xf32> to vector<8x4x64xf32>
    %27 = arith.mulf %0, %26 : vector<8x4x64xf32>
    %28 = vector.broadcast %25 : vector<1x4x1xf32> to vector<8x4x64xf32>
    %29 = arith.addf %27, %28 : vector<8x4x64xf32>
    %c0_15 = arith.constant 0 : index
    %c0_16 = arith.constant 0 : index
    %c0_17 = arith.constant 0 : index
    %30 = vector.load %arg3[%c0_15, %c0_16, %c0_17] : memref<8x4x64xf32, #tpu.memory_space<vmem>>, vector<8x4x64xf32>
    tpu.vector_store %arg3[%c0_15, %c0_16, %c0_17], %29 {strides = array<i32>} : memref<8x4x64xf32, #tpu.memory_space<vmem>>, vector<8x4x64xf32>,
    return
  }
}

</mosaic_0001>

<bundles_post_ra>
// kernel: tpu_custom_call.1
= control target key start
LH: loop header
LB: loop body
LE: loop exit
PB: predicated region body
PF: predicated region fallthrough
CT: control target
= control target key end

     0   :  { %8 = vsyncpa [#allocation3], 0  ;;  %s336_s0 = inlined_call_operand.hbm [shape: f32[8,4,64], index: 0, kind: input, shape index: {}]   ;;  %s337_s1 = inlined_call_operand.vmem [shape: f32[1,4,1], index: 1, kind: input, shape index: {}]   ;;  %s338_s2 = inlined_call_operand.vmem [shape: f32[1,4,1], index: 2, kind: input, shape index: {}]   ;;  %s339_s3 = inlined_call_operand.hbm [shape: f32[8,4,64], index: 3, kind: output, shape index: {}]  }
   0x1   :  { %9 = vsyncpa [#allocation4], 0  ;;  %s14_s14 = sshll.u32 %s336_s0, 4  ;;  %s219_s15 = smov [#allocation2]   ;;  %s15_s14 = int_to_ptr.hbm [resolvable:$true] %s14_s14 }
   0x2   :  { %s16_s16 = sshll.u32 %s219_s15, 4  ;;  %s220_s17 = smov 64   ;;  %s17_s16 = int_to_ptr.vmem [resolvable:$true] %s16_s16 }
   0x3   :  { %s221_s18 = smov 4  }
   0x4   :  { %22 = dma.hbm_to_vmem [thread:$0]  %s15_s14, 512, %s17_s16, [#allocation3], %s220_s17, %s220_s17, %s221_s18  }
   0x5   :  { %215 = dma.done.wait [#allocation3], 512  }
   0x6   :  { %216 = vsyncadd [#allocation3], 4294966784  ;;  %vm39_vm0 = vcmask 519168   ;;  %v250_v0 = vld [vmem:[#allocation2] sm:$0xf]  ;;  %v222_v48 = vmov 0  }
   0x7   :  { %v252_v1 = vld [vmem:[#allocation2 + $0x4] sm:$0xf]  ;;  %v254_v2 = vld [vmem:[#allocation2 + $0x8] sm:$0xf]  ;;  %v256_v3 = vld [vmem:[#allocation2 + $0xc] sm:$0xf]  ;;  %v58_v4 = vmul.f32 %v250_v0, %v250_v0  ;;  %163 = vset.pattern.permute.xlu1 %v222_v48  ;;  %164 = vset.pattern.permute.xlu0 %v222_v48 }
   0x8   :  { %v40_v5 = vsel %vm39_vm0, %v250_v0, 0.0  ;;  %v41_v6 = vsel %vm39_vm0, %v252_v1, 0.0  ;;  %v59_v7 = vmul.f32 %v252_v1, %v252_v1  ;;  %v60_v8 = vmul.f32 %v254_v2, %v254_v2  ;;  %v268_v9 = vld [vmem:[#allocation2 + $0x10] sm:$0xf]  ;;  %v276_v14 = vld [vmem:[#allocation2 + $0x14] sm:$0xf] }
   0x9   :  { %v42_v10 = vadd.f32 %v41_v6, %v40_v5  ;;  %v43_v11 = vsel %vm39_vm0, %v254_v2, 0.0  ;;  %v45_v12 = vsel %vm39_vm0, %v256_v3, 0.0  ;;  %v61_v13 = vmul.f32 %v256_v3, %v256_v3  ;;  %v285_v21 = vld [vmem:[#allocation2 + $0x18] sm:$0xf]  ;;  %v292_v27 = vld [vmem:[#allocation2 + $0x1c] sm:$0xf] }
   0xa   :  { %v66_v16 = vsel %vm39_vm0, %v58_v4, 0.0  ;;  %v47_v17 = vsel %vm39_vm0, %v268_v9, 0.0  ;;  %v62_v18 = vmul.f32 %v268_v9, %v268_v9  ;;  %v67_v19 = vsel %vm39_vm0, %v59_v7, 0.0  ;;  %v89_v62 = vld [vmem:[%s337_s1] sm:$0xf]  ;;  %s223_s1 = smov [#allocation5]  }
   0xb   :  { %v44_v15 = vadd.f32 %v43_v11, %v42_v10  ;;  %v69_v20 = vsel %vm39_vm0, %v60_v8, 0.0  ;;  %v68_v23 = vadd.f32 %v67_v19, %v66_v16  ;;  %v49_v24 = vsel %vm39_vm0, %v276_v14, 0.0  ;;  %v102_v7 = vld [vmem:[%s338_s2] sm:$0xf]  ;;  %s143_s2 = sshll.u32 %s223_s1, 4  ;;  %s145_s24 = sshll.u32 %s339_s3, 4  ;;  %s144_s2 = int_to_ptr.vmem [resolvable:$true] %s143_s2  ;;  %s146_s24 = int_to_ptr.hbm [resolvable:$true] %s145_s24 }
   0xc   :  { %v63_v25 = vmul.f32 %v276_v14, %v276_v14  ;;  %v71_v26 = vsel %vm39_vm0, %v61_v13, 0.0  ;;  %v51_v30 = vsel %vm39_vm0, %v285_v21, 0.0  ;;  %v64_v31 = vmul.f32 %v285_v21, %v285_v21 }
   0xd   :  { %v46_v22 = vadd.f32 %v45_v12, %v44_v15  ;;  %v70_v29 = vadd.f32 %v69_v20, %v68_v23  ;;  %v73_v32 = vsel %vm39_vm0, %v62_v18, 0.0  ;;  %v53_v35 = vsel %vm39_vm0, %v292_v27, 0.0 }
   0xe   :  { %v65_v36 = vmul.f32 %v292_v27, %v292_v27  ;;  %v75_v37 = vsel %vm39_vm0, %v63_v25, 0.0  ;;  %v77_v40 = vsel %vm39_vm0, %v64_v31, 0.0 }
   0xf   :  { %v48_v28 = vadd.f32 %v47_v17, %v46_v22  ;;  %v72_v34 = vadd.f32 %v71_v26, %v70_v29 }
  0x10   :  { %v79_v43 = vsel %vm39_vm0, %v65_v36, 0.0 }
  0x11   :  { %v50_v33 = vadd.f32 %v49_v24, %v48_v28  ;;  %v74_v39 = vadd.f32 %v73_v32, %v72_v34 }
  0x13   :  { %v52_v38 = vadd.f32 %v51_v30, %v50_v33  ;;  %v76_v42 = vadd.f32 %v75_v37, %v74_v39 }
  0x15   :  { %v54_v41 = vadd.f32 %v53_v35, %v52_v38  ;;  %v78_v45 = vadd.f32 %v77_v40, %v76_v42 }
  0x17   :  { %v55_v44 = vsel %vm39_vm0, %v54_v41, 0.0  ;;  %v80_v46 = vadd.f32 %v79_v43, %v78_v45 }
  0x18   :  { %56 = vadd.xlane.f32.xlu0 %v55_v44 }
  0x19   :  { %v81_v47 = vsel %vm39_vm0, %v80_v46, 0.0 }
  0x20   :  { %82 = vadd.xlane.f32.xlu0 %v81_v47 }
  0x8b   :  { %v57_v49 = vpop.xlane.xlu0 %56 }
  0x8c   :  { %v84_v50 = vmul.f32 0.001953125, %v57_v49 }
  0x8e   :  { %v86_v52 = vmul.f32 %v84_v50, %v84_v50 }
  0x93   :  { %v83_v51 = vpop.xlane.xlu0 %82 }
  0x94   :  { %v85_v53 = vmul.f32 0.001953125, %v83_v51 }
  0x96   :  { %v87_v54 = vsub.f32 %v85_v53, %v86_v52 }
  0x98   :  { %v88_v55 = vmax.f32 %v87_v54, 0.0 }
  0x9a   :  { %v90_v56 = vadd.f32 1e-05, %v88_v55 }
  0x9c   :  { %165 = vrsqrt.f32 %v90_v56  ;;  %vm97_vm2 = vweird.f32 %v90_v56 }
  0xa2   :  { %v166_v57 = vpop.eup %165 }
  0xa3   :  { %v92_v58 = vmul.f32 %v166_v57, %v90_v56  ;;  %vm98_vm1 = vweird.f32 %v166_v57 }
  0xa4   :  { %vm99_vm3 = vmor %vm97_vm2, %vm98_vm1 }
  0xa5   :  { %v93_v59 = vmul.f32 %v166_v57, %v92_v58 }
  0xa7   :  { %v94_v60 = vmul.f32 0.5, %v93_v59 }
  0xa9   :  { %v95_v61 = vsub.f32 1.5, %v94_v60 }
  0xab   :  { %v96_v63 = vmul.f32 %v166_v57, %v95_v61 }
  0xad   :  { %v100_v4 = vsel %vm99_vm3, %v166_v57, %v96_v63 }
  0xae   :  { %v101_v5 = vmul.f32 %v100_v4, %v89_v62 }
  0xb0   :  { %107 = vperm.xlu1 %163, %v101_v5   ;;  %v103_v6 = vmul.f32 %v101_v5, %v84_v50 }
  0xb2   :  { %v104_v8 = vsub.f32 %v102_v7, %v103_v6 }
  0xb8   :  { %120 = vperm.xlu1 %163, %v104_v8  }
 0x122   :  { %v108_v10 = vpop.permute.xlu1 %107 }
 0x123   :  { %v110_v11 = vmul.f32 %v108_v10, %v250_v0  ;;  %v111_v12 = vmul.f32 %v108_v10, %v252_v1  ;;  %v112_v13 = vmul.f32 %v108_v10, %v254_v2  ;;  %v113_v15 = vmul.f32 %v108_v10, %v256_v3 }
 0x124   :  { %v114_v17 = vmul.f32 %v108_v10, %v268_v9  ;;  %v115_v22 = vmul.f32 %v108_v10, %v276_v14  ;;  %v116_v24 = vmul.f32 %v108_v10, %v285_v21  ;;  %v117_v0 = vmul.f32 %v108_v10, %v292_v27 }
 0x12a   :  { %v121_v16 = vpop.permute.xlu1 %120 }
 0x12b   :  { %v123_v18 = vadd.f32 %v121_v16, %v110_v11  ;;  %v124_v19 = vadd.f32 %v121_v16, %v111_v12  ;;  %v125_v20 = vadd.f32 %v121_v16, %v112_v13  ;;  %v126_v23 = vadd.f32 %v121_v16, %v113_v15 }
 0x12c   :  { %v127_v25 = vadd.f32 %v121_v16, %v114_v17  ;;  %v128_v1 = vadd.f32 %v121_v16, %v115_v22  ;;  %v129_v2 = vadd.f32 %v121_v16, %v116_v24  ;;  %v130_v3 = vadd.f32 %v121_v16, %v117_v0 }
 0x12d   :  { %131 = vst.msk [vmem:[#allocation5] sm:$0xf] %vm39_vm0, %v123_v18 }
 0x12e   :  { %132 = vst.msk [vmem:[#allocation5 + $0x4] sm:$0xf] %vm39_vm0, %v124_v19 }
 0x12f   :  { %133 = vst.msk [vmem:[#allocation5 + $0x8] sm:$0xf] %vm39_vm0, %v125_v20 }
 0x130   :  { %134 = vst.msk [vmem:[#allocation5 + $0xc] sm:$0xf] %vm39_vm0, %v126_v23 }
 0x131   :  { %135 = vst.msk [vmem:[#allocation5 + $0x10] sm:$0xf] %vm39_vm0, %v127_v25 }
 0x132   :  { %136 = vst.msk [vmem:[#allocation5 + $0x14] sm:$0xf] %vm39_vm0, %v128_v1 }
 0x133   :  { %137 = vst.msk [vmem:[#allocation5 + $0x18] sm:$0xf] %vm39_vm0, %v129_v2 }
 0x134   :  { %138 = vst.msk [vmem:[#allocation5 + $0x1c] sm:$0xf] %vm39_vm0, %v130_v3 }
 0x135   :  { %151 = dma.vmem_to_hbm [thread:$0]  %s144_s2, 512, %s146_s24, [#allocation4], %s220_s17, %s220_s17, %s221_s18  }
 0x136   :  { %217 = dma.done.wait [#allocation4], 512  }
 0x137   :  { %218 = vsyncadd [#allocation4], 4294966784 }
 0x138   :  { %156 = vsyncpa [#allocation3], 1 }
 0x139   :  { %157 = vsyncpa [#allocation4], 1 }

</bundles_post_ra>
